<compile_context>
chip_gen: v5e
topology: v5e:2x2
jax: 0.10.0
libtpu: 0.0.40
codegen_flags: <defaults>
</compile_context>

<pallas_src>
import jax
import jax.numpy as jnp
from jax.experimental import pallas as pl
from jax.experimental.pallas import tpu as pltpu

EPS = 1e-5


def _round_up(n, m):
    return ((n + m - 1) // m) * m


def _vmem_cap_bytes():
    """Per-generation VMEM capacity (falls back to a v7x-safe 64 MiB)."""
    try:
        return int(pltpu.get_tpu_info().vmem_capacity_bytes)
    except Exception:
        return 64 * 1024 * 1024


def _estimate_vmem_bytes(tm, D, C, x_it, c_it, w_it, weight_bufs=2):
    row_tiles = 2 * tm * D * x_it + 2 * tm * C * c_it + 2 * tm * D * x_it
    weights = weight_bufs * 2 * C * D * w_it          # two (C, D) halves
    vecs = weight_bufs * 8 * D * 4                    # (4, D) padded to 8 sublanes
    interm = 4 * tm * (2 * C + 6 * D)                 # live f32 intermediates
    return row_tiles + weights + vecs + interm


def _ada_ln_kernel(x_ref, cond_ref, ws_ref, wsh_ref, vecs_ref, o_ref):
    # --- conditioning path: SiLU (in cond dtype) -> cast -> two (C, D) matmuls
    c = cond_ref[...]
    silu = (c * jax.nn.sigmoid(c)).astype(ws_ref.dtype)   # .to(x.dtype) semantics

    b_scale = vecs_ref[0:1, :].astype(jnp.float32)
    b_shift = vecs_ref[1:2, :].astype(jnp.float32)
    gamma = vecs_ref[2:3, :].astype(jnp.float32)
    beta = vecs_ref[3:4, :].astype(jnp.float32)

    scale = jnp.dot(silu, ws_ref[...],
                    preferred_element_type=jnp.float32) + b_scale
    shift = jnp.dot(silu, wsh_ref[...],
                    preferred_element_type=jnp.float32) + b_shift

    # --- LayerNorm over last dim (two-pass mean / variance, f32) ---
    x = x_ref[...].astype(jnp.float32)
    mu = jnp.mean(x, axis=-1, keepdims=True)
    xc = x - mu
    var = jnp.mean(xc * xc, axis=-1, keepdims=True)
    xn = xc * jax.lax.rsqrt(var + EPS)
    xn = xn * gamma + beta                                 # elementwise affine

    # --- modulation: xn * (1 + scale) + shift, fused ---
    o_ref[...] = (xn + xn * scale + shift).astype(o_ref.dtype)


def prepare_ada_ln_params(w, b, gamma, beta, *, weight_dtype=None):
    """One-time ("module init") parameter prep.

    w: (C, 2D) pre-transposed nn.Linear weight; b: (2D,); gamma/beta: (D,).
    Returns (w_scale (C,D), w_shift (C,D), vecs (4,D)=[b_scale,b_shift,gamma,beta]).
    Pass weight_dtype=jnp.bfloat16 to feed the MXU bf16 in production.
    """
    D = w.shape[-1] // 2
    w_scale, w_shift = w[:, :D], w[:, D:]
    if weight_dtype is not None:
        w_scale = w_scale.astype(weight_dtype)
        w_shift = w_shift.astype(weight_dtype)
    vecs = jnp.stack(
        [b[:D].astype(jnp.float32), b[D:].astype(jnp.float32),
         gamma.astype(jnp.float32), beta.astype(jnp.float32)], axis=0)  # (4, D)
    return w_scale, w_shift, vecs


def ada_layer_norm_continuous(x, cond, w_scale, w_shift, vecs, *, tile_m=None):
    """x: (B, S, D); cond: (B, S, C); prepared params from prepare_ada_ln_params."""
    B, S, D = x.shape
    C = cond.shape[-1]
    M = B * S

    x2 = x.reshape(M, D)
    c2 = cond.reshape(M, C)

    x_it = jnp.dtype(x.dtype).itemsize
    c_it = jnp.dtype(cond.dtype).itemsize
    w_it = jnp.dtype(w_scale.dtype).itemsize
    sub = 16 if x_it == 2 else 8

    budget = int(0.75 * _vmem_cap_bytes())

    # Row tile: big enough to amortize ~0.35us/step, shrunk to fit the VMEM budget.
    if tile_m is None:
        tile_m = 512 if D <= 512 else 256
    tm = max(sub, min(_round_up(tile_m, sub), _round_up(M, sub)))
    while tm > sub and _estimate_vmem_bytes(tm, D, C, x_it, c_it, w_it) > budget:
        tm = max(sub, _round_up(tm // 2, sub))

    need = _estimate_vmem_bytes(tm, D, C, x_it, c_it, w_it)
    vmem_limit = int(min(budget, max(need + need // 2, 32 * 1024 * 1024)))

    grid = (pl.cdiv(M, tm),)   # partial last block handled by Pallas (no pad/slice)

    def _call(single_buffer_invariants):
        inv_kwargs = ({"pipeline_mode": pl.Buffered(1)}
                      if single_buffer_invariants else {})
        in_specs = [
            pl.BlockSpec((tm, D), lambda i: (i, 0)),               # x rows
            pl.BlockSpec((tm, C), lambda i: (i, 0)),               # cond rows
            pl.BlockSpec((C, D), lambda i: (0, 0), **inv_kwargs),  # w_scale (invariant)
            pl.BlockSpec((C, D), lambda i: (0, 0), **inv_kwargs),  # w_shift (invariant)
            pl.BlockSpec((4, D), lambda i: (0, 0), **inv_kwargs),  # packed b/b/gamma/beta
        ]
        return pl.pallas_call(
            _ada_ln_kernel,
            out_shape=jax.ShapeDtypeStruct((M, D), x.dtype),
            grid_spec=pltpu.PrefetchScalarGridSpec(
                num_scalar_prefetch=0,
                grid=grid,
                in_specs=in_specs,
                out_specs=pl.BlockSpec((tm, D), lambda i: (i, 0)),
            ),
            compiler_params=pltpu.CompilerParams(
                dimension_semantics=("parallel",),
                vmem_limit_bytes=vmem_limit),
        )(x2, c2, w_scale, w_shift, vecs)

    try:
        out = _call(True)
    except Exception:
        # pl.Buffered(1) not supported on this jax version -> default buffering.
        out = _call(False)

    return out.reshape(B, S, D)


def _reference(x, cond, w, b, gamma, beta):
    silu = cond * jax.nn.sigmoid(cond)
    emb = silu @ w + b
    D = x.shape[-1]
    scale, shift = emb[..., :D], emb[..., D:]
    mu = jnp.mean(x, axis=-1, keepdims=True)
    var = jnp.mean((x - mu) ** 2, axis=-1, keepdims=True)
    xn = (x - mu) * jax.lax.rsqrt(var + EPS) * gamma + beta
    return xn * (1.0 + scale) + shift


def _run_case(key, B, S, D, C):
    kx, kc, kw, kb, kg, kbe = jax.random.split(key, 6)
    x = jax.random.normal(kx, (B, S, D), dtype=jnp.float32)
    cond = jax.random.normal(kc, (B, S, C), dtype=jnp.float32)
    # nn.Linear(C, 2D, bias=True) weight stored pre-transposed as (C, 2D).
    w = jax.random.normal(kw, (C, 2 * D), dtype=jnp.float32) * 0.02
    b = jax.random.normal(kb, (2 * D,), dtype=jnp.float32) * 0.02
    gamma = 1.0 + 0.01 * jax.random.normal(kg, (D,), dtype=jnp.float32)
    beta = 0.01 * jax.random.normal(kbe, (D,), dtype=jnp.float32)

    # One-time parameter prep (module init), then the per-call forward.
    w_scale, w_shift, vecs = prepare_ada_ln_params(w, b, gamma, beta)
    out = ada_layer_norm_continuous(x, cond, w_scale, w_shift, vecs)
    jax.block_until_ready(out)

    ref = _reference(x, cond, w, b, gamma, beta)
    assert out.shape == ref.shape
    assert jnp.allclose(out, ref, atol=1e-4, rtol=1e-4), \
        f"mismatch vs reference for shape B={B} S={S} D={D} C={C}"


if __name__ == "__main__":
    key = jax.random.PRNGKey(0)
    k1, k2 = jax.random.split(key)
    # Small deterministic case: batch=2, seq=8, embedding_dim=32, cond_dim=16.
    _run_case(k1, B=2, S=8, D=32, C=16)
    # Larger case exercising a multi-step grid with a partial last block (M=600).
    _run_case(k2, B=2, S=300, D=128, C=64)
    print("KERNEL_OK")
</pallas_src>

<mosaic_0001>
module attributes {stable_mosaic.version = 11 : i64} {
  func.func @_ada_ln_kernel(%arg0: i32, %arg1: memref<16x32xf32, #tpu.memory_space<vmem>>, %arg2: memref<16x16xf32, #tpu.memory_space<vmem>>, %arg3: memref<16x32xf32, #tpu.memory_space<vmem>>, %arg4: memref<16x32xf32, #tpu.memory_space<vmem>>, %arg5: memref<4x32xf32, #tpu.memory_space<vmem>>, %arg6: memref<16x32xf32, #tpu.memory_space<vmem>>) attributes {dimension_semantics = [#tpu.dimension_semantics<parallel>], iteration_bounds = array<i64: 1>, scalar_prefetch = 0 : i64, scratch_operands = 0 : i64, tpu.core_type = #tpu.core_type<tc>, window_params = [{transform_indices = @transform_0, window_bounds = array<i64: 16, 32>}, {transform_indices = @transform_1, window_bounds = array<i64: 16, 16>}, {pipeline_mode = #tpu.pipeline_mode<synchronous>, transform_indices = @transform_2, window_bounds = array<i64: 16, 32>}, {pipeline_mode = #tpu.pipeline_mode<synchronous>, transform_indices = @transform_3, window_bounds = array<i64: 16, 32>}, {pipeline_mode = #tpu.pipeline_mode<synchronous>, transform_indices = @transform_4, window_bounds = array<i64: 4, 32>}, {transform_indices = @transform_5, window_bounds = array<i64: 16, 32>}]} {
    %c0 = arith.constant 0 : index
    %c0_0 = arith.constant 0 : index
    %0 = vector.load %arg2[%c0, %c0_0] : memref<16x16xf32, #tpu.memory_space<vmem>>, vector<16x16xf32>
    %1 = arith.negf %0 : vector<16x16xf32>
    %2 = math.exp %1 : vector<16x16xf32>
    %cst = arith.constant 1.000000e+00 : f32
    %3 = vector.broadcast %cst : f32 to vector<16x16xf32>
    %4 = arith.addf %3, %2 : vector<16x16xf32>
    %5 = arith.divf %3, %4 : vector<16x16xf32>
    %6 = arith.mulf %0, %5 : vector<16x16xf32>
    %c0_1 = arith.constant 0 : index
    %c0_2 = arith.constant 0 : index
    %7 = vector.load %arg5[%c0_1, %c0_2] : memref<4x32xf32, #tpu.memory_space<vmem>>, vector<1x32xf32>
    %c1 = arith.constant 1 : index
    %c0_3 = arith.constant 0 : index
    %8 = vector.load %arg5[%c1, %c0_3] : memref<4x32xf32, #tpu.memory_space<vmem>>, vector<1x32xf32>
    %c2 = arith.constant 2 : index
    %c0_4 = arith.constant 0 : index
    %9 = vector.load %arg5[%c2, %c0_4] : memref<4x32xf32, #tpu.memory_space<vmem>>, vector<1x32xf32>
    %c3 = arith.constant 3 : index
    %c0_5 = arith.constant 0 : index
    %10 = vector.load %arg5[%c3, %c0_5] : memref<4x32xf32, #tpu.memory_space<vmem>>, vector<1x32xf32>
    %c0_6 = arith.constant 0 : index
    %c0_7 = arith.constant 0 : index
    %11 = vector.load %arg3[%c0_6, %c0_7] : memref<16x32xf32, #tpu.memory_space<vmem>>, vector<16x32xf32>
    %cst_8 = arith.constant dense<0.000000e+00> : vector<16x32xf32>
    %12 = tpu.matmul %6, %11, %cst_8 {dimension_numbers = #tpu.dot_dimension_numbers<[1], [0], [0], [1], [0, 0, 1, 1], [], []>} : vector<16x16xf32>, vector<16x32xf32>, vector<16x32xf32> -> vector<16x32xf32>
    %13 = vector.broadcast %7 : vector<1x32xf32> to vector<16x32xf32>
    %14 = arith.addf %12, %13 : vector<16x32xf32>
    %c0_9 = arith.constant 0 : index
    %c0_10 = arith.constant 0 : index
    %15 = vector.load %arg4[%c0_9, %c0_10] : memref<16x32xf32, #tpu.memory_space<vmem>>, vector<16x32xf32>
    %cst_11 = arith.constant dense<0.000000e+00> : vector<16x32xf32>
    %16 = tpu.matmul %6, %15, %cst_11 {dimension_numbers = #tpu.dot_dimension_numbers<[1], [0], [0], [1], [0, 0, 1, 1], [], []>} : vector<16x16xf32>, vector<16x32xf32>, vector<16x32xf32> -> vector<16x32xf32>
    %17 = vector.broadcast %8 : vector<1x32xf32> to vector<16x32xf32>
    %18 = arith.addf %16, %17 : vector<16x32xf32>
    %c0_12 = arith.constant 0 : index
    %c0_13 = arith.constant 0 : index
    %19 = vector.load %arg1[%c0_12, %c0_13] : memref<16x32xf32, #tpu.memory_space<vmem>>, vector<16x32xf32>
    %cst_14 = arith.constant dense<0.000000e+00> : vector<16xf32>
    %20 = vector.multi_reduction <add>, %19, %cst_14 [1] : vector<16x32xf32> to vector<16xf32>
    %21 = vector.shape_cast %20 : vector<16xf32> to vector<16x1xf32>
    %cst_15 = arith.constant 3.200000e+01 : f32
    %22 = vector.broadcast %cst_15 : f32 to vector<16x1xf32>
    %23 = arith.divf %21, %22 : vector<16x1xf32>
    %24 = vector.broadcast %23 : vector<16x1xf32> to vector<16x32xf32>
    %25 = arith.subf %19, %24 : vector<16x32xf32>
    %26 = arith.mulf %25, %25 : vector<16x32xf32>
    %cst_16 = arith.constant dense<0.000000e+00> : vector<16xf32>
    %27 = vector.multi_reduction <add>, %26, %cst_16 [1] : vector<16x32xf32> to vector<16xf32>
    %28 = vector.shape_cast %27 : vector<16xf32> to vector<16x1xf32>
    %cst_17 = arith.constant 3.200000e+01 : f32
    %29 = vector.broadcast %cst_17 : f32 to vector<16x1xf32>
    %30 = arith.divf %28, %29 : vector<16x1xf32>
    %cst_18 = arith.constant 9.99999974E-6 : f32
    %31 = vector.broadcast %cst_18 : f32 to vector<16x1xf32>
    %32 = arith.addf %30, %31 : vector<16x1xf32>
    %33 = math.rsqrt %32 : vector<16x1xf32>
    %34 = vector.broadcast %33 : vector<16x1xf32> to vector<16x32xf32>
    %35 = arith.mulf %25, %34 : vector<16x32xf32>
    %36 = vector.broadcast %9 : vector<1x32xf32> to vector<16x32xf32>
    %37 = arith.mulf %35, %36 : vector<16x32xf32>
    %38 = vector.broadcast %10 : vector<1x32xf32> to vector<16x32xf32>
    %39 = arith.addf %37, %38 : vector<16x32xf32>
    %40 = arith.mulf %39, %14 : vector<16x32xf32>
    %41 = arith.addf %39, %40 : vector<16x32xf32>
    %42 = arith.addf %41, %18 : vector<16x32xf32>
    %c0_19 = arith.constant 0 : index
    %c0_20 = arith.constant 0 : index
    %43 = vector.load %arg6[%c0_19, %c0_20] : memref<16x32xf32, #tpu.memory_space<vmem>>, vector<16x32xf32>
    tpu.vector_store %arg6[%c0_19, %c0_20], %42 {strides = array<i32>} : memref<16x32xf32, #tpu.memory_space<vmem>>, vector<16x32xf32>,
    return
  }
  func.func @transform_0(%arg0: i32) -> (i32, i32) {
    %c0_i32 = arith.constant 0 : i32
    %c0_i32_0 = arith.constant 0 : i32
    return %arg0, %c0_i32 : i32, i32
  }
  func.func @transform_1(%arg0: i32) -> (i32, i32) {
    %c0_i32 = arith.constant 0 : i32
    %c0_i32_0 = arith.constant 0 : i32
    return %arg0, %c0_i32 : i32, i32
  }
  func.func @transform_2(%arg0: i32) -> (i32, i32) {
    %c0_i32 = arith.constant 0 : i32
    %c0_i32_0 = arith.constant 0 : i32
    %c0_i32_1 = arith.constant 0 : i32
    return %c0_i32, %c0_i32_0 : i32, i32
  }
  func.func @transform_3(%arg0: i32) -> (i32, i32) {
    %c0_i32 = arith.constant 0 : i32
    %c0_i32_0 = arith.constant 0 : i32
    %c0_i32_1 = arith.constant 0 : i32
    return %c0_i32, %c0_i32_0 : i32, i32
  }
  func.func @transform_4(%arg0: i32) -> (i32, i32) {
    %c0_i32 = arith.constant 0 : i32
    %c0_i32_0 = arith.constant 0 : i32
    %c0_i32_1 = arith.constant 0 : i32
    return %c0_i32, %c0_i32_0 : i32, i32
  }
  func.func @transform_5(%arg0: i32) -> (i32, i32) {
    %c0_i32 = arith.constant 0 : i32
    %c0_i32_0 = arith.constant 0 : i32
    return %arg0, %c0_i32 : i32, i32
  }
}

module attributes {stable_mosaic.version = 11 : i64} {
  func.func @_ada_ln_kernel(%arg0: i32, %arg1: memref<16x32xf32, #tpu.memory_space<vmem>>, %arg2: memref<16x16xf32, #tpu.memory_space<vmem>>, %arg3: memref<16x32xf32, #tpu.memory_space<vmem>>, %arg4: memref<16x32xf32, #tpu.memory_space<vmem>>, %arg5: memref<4x32xf32, #tpu.memory_space<vmem>>, %arg6: memref<16x32xf32, #tpu.memory_space<vmem>>) attributes {dimension_semantics = [#tpu.dimension_semantics<parallel>], iteration_bounds = array<i64: 1>, scalar_prefetch = 0 : i64, scratch_operands = 0 : i64, tpu.core_type = #tpu.core_type<tc>, window_params = [{transform_indices = @transform_0, window_bounds = array<i64: 16, 32>}, {transform_indices = @transform_1, window_bounds = array<i64: 16, 16>}, {pipeline_mode = #tpu.pipeline_mode<synchronous>, transform_indices = @transform_2, window_bounds = array<i64: 16, 32>}, {pipeline_mode = #tpu.pipeline_mode<synchronous>, transform_indices = @transform_3, window_bounds = array<i64: 16, 32>}, {pipeline_mode = #tpu.pipeline_mode<synchronous>, transform_indices = @transform_4, window_bounds = array<i64: 4, 32>}, {transform_indices = @transform_5, window_bounds = array<i64: 16, 32>}]} {
    %c0 = arith.constant 0 : index
    %c0_0 = arith.constant 0 : index
    %0 = vector.load %arg2[%c0, %c0_0] : memref<16x16xf32, #tpu.memory_space<vmem>>, vector<16x16xf32>
    %1 = arith.negf %0 : vector<16x16xf32>
    %2 = math.exp %1 : vector<16x16xf32>
    %cst = arith.constant 1.000000e+00 : f32
    %3 = vector.broadcast %cst : f32 to vector<16x16xf32>
    %4 = arith.addf %3, %2 : vector<16x16xf32>
    %5 = arith.divf %3, %4 : vector<16x16xf32>
    %6 = arith.mulf %0, %5 : vector<16x16xf32>
    %c0_1 = arith.constant 0 : index
    %c0_2 = arith.constant 0 : index
    %7 = vector.load %arg5[%c0_1, %c0_2] : memref<4x32xf32, #tpu.memory_space<vmem>>, vector<1x32xf32>
    %c1 = arith.constant 1 : index
    %c0_3 = arith.constant 0 : index
    %8 = vector.load %arg5[%c1, %c0_3] : memref<4x32xf32, #tpu.memory_space<vmem>>, vector<1x32xf32>
    %c2 = arith.constant 2 : index
    %c0_4 = arith.constant 0 : index
    %9 = vector.load %arg5[%c2, %c0_4] : memref<4x32xf32, #tpu.memory_space<vmem>>, vector<1x32xf32>
    %c3 = arith.constant 3 : index
    %c0_5 = arith.constant 0 : index
    %10 = vector.load %arg5[%c3, %c0_5] : memref<4x32xf32, #tpu.memory_space<vmem>>, vector<1x32xf32>
    %c0_6 = arith.constant 0 : index
    %c0_7 = arith.constant 0 : index
    %11 = vector.load %arg3[%c0_6, %c0_7] : memref<16x32xf32, #tpu.memory_space<vmem>>, vector<16x32xf32>
    %cst_8 = arith.constant dense<0.000000e+00> : vector<16x32xf32>
    %12 = tpu.matmul %6, %11, %cst_8 {dimension_numbers = #tpu.dot_dimension_numbers<[1], [0], [0], [1], [0, 0, 1, 1], [], []>} : vector<16x16xf32>, vector<16x32xf32>, vector<16x32xf32> -> vector<16x32xf32>
    %13 = vector.broadcast %7 : vector<1x32xf32> to vector<16x32xf32>
    %14 = arith.addf %12, %13 : vector<16x32xf32>
    %c0_9 = arith.constant 0 : index
    %c0_10 = arith.constant 0 : index
    %15 = vector.load %arg4[%c0_9, %c0_10] : memref<16x32xf32, #tpu.memory_space<vmem>>, vector<16x32xf32>
    %cst_11 = arith.constant dense<0.000000e+00> : vector<16x32xf32>
    %16 = tpu.matmul %6, %15, %cst_11 {dimension_numbers = #tpu.dot_dimension_numbers<[1], [0], [0], [1], [0, 0, 1, 1], [], []>} : vector<16x16xf32>, vector<16x32xf32>, vector<16x32xf32> -> vector<16x32xf32>
    %17 = vector.broadcast %8 : vector<1x32xf32> to vector<16x32xf32>
    %18 = arith.addf %16, %17 : vector<16x32xf32>
    %c0_12 = arith.constant 0 : index
    %c0_13 = arith.constant 0 : index
    %19 = vector.load %arg1[%c0_12, %c0_13] : memref<16x32xf32, #tpu.memory_space<vmem>>, vector<16x32xf32>
    %cst_14 = arith.constant dense<0.000000e+00> : vector<16xf32>
    %20 = vector.multi_reduction <add>, %19, %cst_14 [1] : vector<16x32xf32> to vector<16xf32>
    %21 = vector.shape_cast %20 : vector<16xf32> to vector<16x1xf32>
    %cst_15 = arith.constant 3.200000e+01 : f32
    %22 = vector.broadcast %cst_15 : f32 to vector<16x1xf32>
    %23 = arith.divf %21, %22 : vector<16x1xf32>
    %24 = vector.broadcast %23 : vector<16x1xf32> to vector<16x32xf32>
    %25 = arith.subf %19, %24 : vector<16x32xf32>
    %26 = arith.mulf %25, %25 : vector<16x32xf32>
    %cst_16 = arith.constant dense<0.000000e+00> : vector<16xf32>
    %27 = vector.multi_reduction <add>, %26, %cst_16 [1] : vector<16x32xf32> to vector<16xf32>
    %28 = vector.shape_cast %27 : vector<16xf32> to vector<16x1xf32>
    %cst_17 = arith.constant 3.200000e+01 : f32
    %29 = vector.broadcast %cst_17 : f32 to vector<16x1xf32>
    %30 = arith.divf %28, %29 : vector<16x1xf32>
    %cst_18 = arith.constant 9.99999974E-6 : f32
    %31 = vector.broadcast %cst_18 : f32 to vector<16x1xf32>
    %32 = arith.addf %30, %31 : vector<16x1xf32>
    %33 = math.rsqrt %32 : vector<16x1xf32>
    %34 = vector.broadcast %33 : vector<16x1xf32> to vector<16x32xf32>
    %35 = arith.mulf %25, %34 : vector<16x32xf32>
    %36 = vector.broadcast %9 : vector<1x32xf32> to vector<16x32xf32>
    %37 = arith.mulf %35, %36 : vector<16x32xf32>
    %38 = vector.broadcast %10 : vector<1x32xf32> to vector<16x32xf32>
    %39 = arith.addf %37, %38 : vector<16x32xf32>
    %40 = arith.mulf %39, %14 : vector<16x32xf32>
    %41 = arith.addf %39, %40 : vector<16x32xf32>
    %42 = arith.addf %41, %18 : vector<16x32xf32>
    %c0_19 = arith.constant 0 : index
    %c0_20 = arith.constant 0 : index
    %43 = vector.load %arg6[%c0_19, %c0_20] : memref<16x32xf32, #tpu.memory_space<vmem>>, vector<16x32xf32>
    tpu.vector_store %arg6[%c0_19, %c0_20], %42 {strides = array<i32>} : memref<16x32xf32, #tpu.memory_space<vmem>>, vector<16x32xf32>,
    return
  }
  func.func @transform_0(%arg0: i32) -> (i32, i32) {
    %c0_i32 = arith.constant 0 : i32
    %c0_i32_0 = arith.constant 0 : i32
    return %arg0, %c0_i32 : i32, i32
  }
  func.func @transform_1(%arg0: i32) -> (i32, i32) {
    %c0_i32 = arith.constant 0 : i32
    %c0_i32_0 = arith.constant 0 : i32
    return %arg0, %c0_i32 : i32, i32
  }
  func.func @transform_2(%arg0: i32) -> (i32, i32) {
    %c0_i32 = arith.constant 0 : i32
    %c0_i32_0 = arith.constant 0 : i32
    %c0_i32_1 = arith.constant 0 : i32
    return %c0_i32, %c0_i32_0 : i32, i32
  }
  func.func @transform_3(%arg0: i32) -> (i32, i32) {
    %c0_i32 = arith.constant 0 : i32
    %c0_i32_0 = arith.constant 0 : i32
    %c0_i32_1 = arith.constant 0 : i32
    return %c0_i32, %c0_i32_0 : i32, i32
  }
  func.func @transform_4(%arg0: i32) -> (i32, i32) {
    %c0_i32 = arith.constant 0 : i32
    %c0_i32_0 = arith.constant 0 : i32
    %c0_i32_1 = arith.constant 0 : i32
    return %c0_i32, %c0_i32_0 : i32, i32
  }
  func.func @transform_5(%arg0: i32) -> (i32, i32) {
    %c0_i32 = arith.constant 0 : i32
    %c0_i32_0 = arith.constant 0 : i32
    return %arg0, %c0_i32 : i32, i32
  }
}

</mosaic_0001>

<bundles_post_ra>
// kernel: tpu_custom_call.1
= control target key start
LH: loop header
LB: loop body
LE: loop exit
PB: predicated region body
PF: predicated region fallthrough
CT: control target
= control target key end

     0   :  { %10 = vsyncpa [#allocation3], 0  ;;  %s577_s0 = inlined_call_operand.hbm [shape: f32[16,32], index: 0, kind: input, shape index: {}]   ;;  %s578_s1 = inlined_call_operand.hbm [shape: f32[16,16], index: 1, kind: input, shape index: {}]   ;;  %s579_s2 = inlined_call_operand.hbm [shape: f32[16,32], index: 2, kind: input, shape index: {}]   ;;  %s580_s3 = inlined_call_operand.hbm [shape: f32[16,32], index: 3, kind: input, shape index: {}]   ;;  %s581_s4 = inlined_call_operand.hbm [shape: f32[4,32], index: 4, kind: input, shape index: {}]   ;;  %s582_s5 = inlined_call_operand.hbm [shape: f32[16,32], index: 5, kind: output, shape index: {}]  }
   0x1   :  { %11 = vsyncpa [#allocation6], 0 }
   0x2   :  { %12 = vsyncpa [#allocation9], 0 }
   0x3   :  { %13 = vsyncpa [#allocation4], 0  ;;  %s31_s20 = sshll.u32 %s578_s1, 4  ;;  %s480_s21 = smov [#allocation5]   ;;  %s32_s20 = int_to_ptr.hbm [resolvable:$true] %s31_s20 }
   0x4   :  { %s33_s22 = sshll.u32 %s480_s21, 4  ;;  %s57_s25 = sshll.u32 %s580_s3, 4  ;;  %s34_s22 = int_to_ptr.vmem [resolvable:$true] %s33_s22  ;;  %s58_s25 = int_to_ptr.hbm [resolvable:$true] %s57_s25 }
   0x5   :  { %s481_s26 = smov 128   ;;  %s482_s27 = smov 8  }
   0x6   :  { %39 = dma.hbm_to_vmem [thread:$0]  %s32_s20, 256, %s34_s22, [#allocation6], %s481_s26, %s481_s26, %s482_s27  }
   0x7   :  { %s483_s28 = smov [#allocation8]   ;;  %s18_s1 = sshll.u32 %s577_s0, 4  ;;  %s19_s1 = int_to_ptr.hbm [resolvable:$true] %s18_s1 }
   0x8   :  { %s59_s29 = sshll.u32 %s483_s28, 4  ;;  %s44_s8 = sshll.u32 %s579_s2, 4  ;;  %s60_s29 = int_to_ptr.vmem [resolvable:$true] %s59_s29  ;;  %s45_s8 = int_to_ptr.hbm [resolvable:$true] %s44_s8 }
   0x9   :  { %65 = dma.hbm_to_vmem [thread:$0]  %s58_s25, 256, %s60_s29, [#allocation9], %s481_s26, %s481_s26, %s482_s27  }
   0xa   :  { %s484_s9 = smov [#allocation2]   ;;  %s485_s11 = smov [#allocation7]  }
   0xb   :  { %s20_s10 = sshll.u32 %s484_s9, 4  ;;  %s46_s0 = sshll.u32 %s485_s11, 4  ;;  %s21_s10 = int_to_ptr.vmem [resolvable:$true] %s20_s10  ;;  %s47_s0 = int_to_ptr.vmem [resolvable:$true] %s46_s0 }
   0xc   :  { %26 = dma.hbm_to_vmem [thread:$0]  %s19_s1, 256, %s21_s10, [#allocation3], %s481_s26, %s481_s26, %s482_s27  }
   0xd   :  { %s71_s14 = sshll.u32 %s581_s4, 4  ;;  %s486_s2 = smov [#allocation10]   ;;  %s72_s14 = int_to_ptr.hbm [resolvable:$true] %s71_s14 }
   0xe   :  { %52 = dma.hbm_to_vmem [thread:$0]  %s45_s8, 256, %s47_s0, [#allocation6], %s481_s26, %s481_s26, %s482_s27  }
   0xf   :  { %s73_s15 = sshll.u32 %s486_s2, 4  ;;  %s74_s15 = int_to_ptr.vmem [resolvable:$true] %s73_s15 }
  0x10   :  { %76 = dma.hbm_to_vmem [thread:$0]  %s72_s14, 64, %s74_s15, [#allocation9]  }
  0x11   :  { %472 = dma.done.wait [#allocation3], 256  }
  0x12   :  { %473 = vsyncadd [#allocation3], 4294967040 }
  0x13   :  { %474 = dma.done.wait [#allocation6], 512  }
  0x14   :  { %475 = vsyncadd [#allocation6], 4294966784 }
  0x15   :  { %476 = dma.done.wait [#allocation9], 320  }
  0x16   :  { %477 = vsyncadd [#allocation9], 4294966976  ;;  %vm204_vm0 = vcmask 261120   ;;  %v546_v0 = vld [vmem:[#allocation2] sm:$0xff]  ;;  %v550_v2 = vld [vmem:[#allocation2 + $0x8] sm:$0xff]  ;;  %v487_v11 = vmov 32.0  }
  0x17   :  { %v205_v1 = vsel %vm204_vm0, %v546_v0, 0.0  ;;  %v208_v3 = vsel %vm204_vm0, %v550_v2, 0.0  ;;  %v97_v4 = vld [vmem:[#allocation5] sm:$0xff]  ;;  %v98_v6 = vld [vmem:[#allocation5 + $0x8] sm:$0xff]  ;;  %v144_v20 = vld [vmem:[#allocation7 + $0x8] sm:$0xff]  ;;  %vm146_vm7 = vcmask 130048  }
  0x18   :  { %206 = vadd.xlane.f32.xlu0 %v205_v1  ;;  %v291_v5 = vmul.f32 -1.442695, %v97_v4  ;;  %v292_v7 = vmul.f32 -1.442695, %v98_v6  ;;  %v143_v21 = vld [vmem:[#allocation7] sm:$0xff]  ;;  %v177_v24 = vld [vmem:[#allocation8 + $0x8] sm:$0xff]  ;;  %167 = vmatpush.msra.mxu0 %v144_v20 }
  0x19   :  { %297 = vmatpush.msra.mxu2 %v144_v20  ;;  %v176_v29 = vld [vmem:[#allocation8] sm:$0xff]  ;;  %193 = vmatpush.msra.mxu1 %v177_v24  ;;  %s488_s4 = smov [#allocation11]   ;;  %s276_s19 = sshll.u32 %s582_s5, 4  ;;  %s277_s19 = int_to_ptr.hbm [resolvable:$true] %s276_s19 }
  0x1a   :  { %314 = vpow2.f32 %v291_v5  ;;  %299 = vmatpush.msra.mxu3 %v177_v24  ;;  %168 = vmatpush.msra.mxu0 %v143_v21  ;;  %s274_s16 = sshll.u32 %s488_s4, 4  ;;  %s275_s16 = int_to_ptr.vmem [resolvable:$true] %s274_s16 }
  0x1b   :  { %316 = vpow2.f32 %v292_v7  ;;  %298 = vmatpush.msra.mxu2 %v143_v21  ;;  %194 = vmatpush.msra.mxu1 %v176_v29  ;;  %v311_v7 = vld [vmem:[#allocation10 + $0x2] ss:$0 sm:$0xff] }
  0x1c   :  { %318 = vrcp.f32 %v487_v11  ;;  %300 = vmatpush.msra.mxu3 %v176_v29 }
  0x20   :  { %209 = vadd.xlane.f32.xlu0 %v208_v3  ;;  %v315_v8 = vpop.eup %314 }
  0x21   :  { %v105_v9 = vadd.f32 1.0, %v315_v8  ;;  %v317_v10 = vpop.eup %316 }
  0x22   :  { %v106_v12 = vadd.f32 1.0, %v317_v10  ;;  %v319_v13 = vpop.eup %318 }
  0x23   :  { %320 = vrcp.f32 %v105_v9  ;;  %v212_v17 = vmul.f32 32.0, %v319_v13  ;;  %vm112_vm1 = vweird.f32 %v105_v9  ;;  %v116_v23 = vand.u32 2147483647, %v105_v9 }
  0x24   :  { %322 = vrcp.f32 %v106_v12  ;;  %v118_v27 = vand.u32 2147483648, %v105_v9  ;;  %vm127_vm4 = vweird.f32 %v106_v12  ;;  %v131_v31 = vand.u32 2147483647, %v106_v12 }
  0x25   :  { %v213_v25 = vsub.f32 1.0, %v212_v17  ;;  %vm117_vm5 = vcmp.eq.f32.partialorder %v116_v23, 8.507059e+37  ;;  %v133_v34 = vand.u32 2147483648, %v106_v12  ;;  %vm216_vm10 = vweird.f32 %v319_v13 }
  0x26   :  { %v119_v32 = vor.u32 1.1754944e-38, %v118_v27  ;;  %vm132_vm9 = vcmp.eq.f32.partialorder %v131_v31, 8.507059e+37 }
  0x27   :  { %v134_v38 = vor.u32 1.1754944e-38, %v133_v34  ;;  %v214_v39 = vmul.f32 %v319_v13, %v213_v25 }
  0x29   :  { %v321_v14 = vpop.eup %320  ;;  %v215_v44 = vadd.f32 %v319_v13, %v214_v39 }
  0x2a   :  { %v108_v15 = vmul.f32 %v321_v14, %v105_v9  ;;  %v323_v16 = vpop.eup %322  ;;  %vm113_vm2 = vweird.f32 %v321_v14 }
  0x2b   :  { %v123_v19 = vmul.f32 %v323_v16, %v106_v12  ;;  %vm554_vm3 = vmor %vm112_vm1, %vm113_vm2  ;;  %vm128_vm6 = vweird.f32 %v323_v16  ;;  %v217_v45 = vsel %vm216_vm10, %v319_v13, %v215_v44  ;;  %v312_v12 = vld [vmem:[#allocation10 + $0x3] ss:$0 sm:$0xff] }
  0x2c   :  { %v109_v18 = vsub.f32 1.0, %v108_v15  ;;  %vm129_vm8 = vmor %vm127_vm4, %vm128_vm6 }
  0x2d   :  { %v124_v28 = vsub.f32 1.0, %v123_v19 }
  0x2e   :  { %v110_v22 = vmul.f32 %v321_v14, %v109_v18 }
  0x2f   :  { %v125_v33 = vmul.f32 %v323_v16, %v124_v28 }
  0x30   :  { %v111_v30 = vadd.f32 %v321_v14, %v110_v22 }
  0x31   :  { %v126_v37 = vadd.f32 %v323_v16, %v125_v33 }
  0x32   :  { %v115_v35 = vsel %vm554_vm3, %v321_v14, %v111_v30 }
  0x33   :  { %v120_v36 = vsel %vm117_vm5, %v119_v32, %v115_v35  ;;  %v130_v41 = vsel %vm129_vm8, %v323_v16, %v126_v37  ;;  %v313_v16 = vld [vmem:[#allocation10 + $0x1] ss:$0 sm:$0xff] }
  0x34   :  { %v137_v40 = vmul.f32 %v120_v36, %v97_v4  ;;  %v135_v42 = vsel %vm132_vm9, %v134_v38, %v130_v41 }
  0x35   :  { %v138_v43 = vmul.f32 %v135_v42, %v98_v6  ;;  %v310_v6 = vld [vmem:[#allocation10] ss:$0 sm:$0xff] }
  0x36   :  { %293 = vmatmul.msk.f32.vlgmr.msra.gmra.mxu0 %vm146_vm7, %v137_v40  ;;  %295 = vmatmul.msk.f32.vlgmr.msra.gmra.mxu1 %vm146_vm7, %v137_v40 }
  0x37   :  { %294 = vmatmul.msk.f32.vlgmr.msra.gmra.mxu2 %vm146_vm7, %v138_v43  ;;  %296 = vmatmul.msk.f32.vlgmr.msra.gmra.mxu3 %vm146_vm7, %v138_v43 }
  0x8b   :  { %v207_v46 = vpop.xlane.xlu0 %206 }
  0x8c   :  { %v218_v47 = vmul.f32 %v217_v45, %v207_v46 }
  0x8e   :  { %v220_v48 = vsub.f32 %v546_v0, %v218_v47 }
  0x90   :  { %v222_v49 = vmul.f32 %v220_v48, %v220_v48 }
  0x92   :  { %v224_v50 = vsel %vm204_vm0, %v222_v49, 0.0 }
  0x93   :  { %225 = vadd.xlane.f32.xlu1 %v224_v50  ;;  %v210_v51 = vpop.xlane.xlu0 %209 }
  0x94   :  { %v219_v52 = vmul.f32 %v217_v45, %v210_v51 }
  0x96   :  { %v221_v53 = vsub.f32 %v550_v2, %v219_v52 }
  0x98   :  { %v223_v54 = vmul.f32 %v221_v53, %v221_v53 }
  0x9a   :  { %v227_v55 = vsel %vm204_vm0, %v223_v54, 0.0 }
  0x9b   :  { %228 = vadd.xlane.f32.xlu1 %v227_v55 }
  0xb3   :  { %v170_v10 = vpop.f32.mrf.mxu0  ;;  %v196_v18 = vpop.f32.mrf.mxu1 }
  0xb4   :  { %v171_v14 = vadd.f32 %v310_v6, %v170_v10  ;;  %v197_v22 = vadd.f32 %v313_v16, %v196_v18 }
  0xba   :  { %v173_v24 = vpop.f32.mrf.mxu2  ;;  %v199_v30 = vpop.f32.mrf.mxu3 }
  0xbb   :  { %v174_v28 = vadd.f32 %v310_v6, %v173_v24  ;;  %v200_v33 = vadd.f32 %v313_v16, %v199_v30 }
 0x106   :  { %v226_v56 = vpop.xlane.xlu1 %225 }
 0x107   :  { %v230_v57 = vmul.f32 %v226_v56, %v217_v45 }
 0x109   :  { %v232_v58 = vadd.f32 1e-05, %v230_v57 }
 0x10b   :  { %324 = vrsqrt.f32 %v232_v58  ;;  %vm240_vm12 = vweird.f32 %v232_v58 }
 0x10e   :  { %v229_v59 = vpop.xlane.xlu1 %228 }
 0x10f   :  { %v231_v60 = vmul.f32 %v229_v59, %v217_v45 }
 0x111   :  { %v325_v61 = vpop.eup %324  ;;  %v233_v62 = vadd.f32 1e-05, %v231_v60 }
 0x112   :  { %v235_v63 = vmul.f32 %v325_v61, %v232_v58  ;;  %vm241_vm11 = vweird.f32 %v325_v61 }
 0x113   :  { %326 = vrsqrt.f32 %v233_v62  ;;  %vm242_vm13 = vmor %vm240_vm12, %vm241_vm11  ;;  %vm250_vm15 = vweird.f32 %v233_v62 }
 0x114   :  { %v236_v0 = vmul.f32 %v325_v61, %v235_v63 }
 0x116   :  { %v237_v1 = vmul.f32 0.5, %v236_v0 }
 0x118   :  { %v238_v3 = vsub.f32 1.5, %v237_v1 }
 0x119   :  { %v327_v4 = vpop.eup %326 }
 0x11a   :  { %v239_v2 = vmul.f32 %v325_v61, %v238_v3  ;;  %v245_v5 = vmul.f32 %v327_v4, %v233_v62  ;;  %vm251_vm14 = vweird.f32 %v327_v4 }
 0x11b   :  { %vm252_vm1 = vmor %vm250_vm15, %vm251_vm14 }
 0x11c   :  { %v243_v8 = vsel %vm242_vm13, %v325_v61, %v239_v2  ;;  %v246_v9 = vmul.f32 %v327_v4, %v245_v5 }
 0x11d   :  { %v254_v11 = vmul.f32 %v243_v8, %v220_v48 }
 0x11e   :  { %v247_v13 = vmul.f32 0.5, %v246_v9 }
 0x11f   :  { %v257_v15 = vmul.f32 %v311_v7, %v254_v11 }
 0x120   :  { %v248_v17 = vsub.f32 1.5, %v247_v13 }
 0x121   :  { %v260_v19 = vadd.f32 %v312_v12, %v257_v15 }
 0x122   :  { %v249_v20 = vmul.f32 %v327_v4, %v248_v17 }
 0x123   :  { %v262_v21 = vmul.f32 %v260_v19, %v171_v14 }
 0x124   :  { %v253_v23 = vsel %vm252_vm1, %v327_v4, %v249_v20 }
 0x125   :  { %v264_v25 = vadd.f32 %v262_v21, %v260_v19  ;;  %v255_v26 = vmul.f32 %v253_v23, %v221_v53 }
 0x127   :  { %v266_v27 = vadd.f32 %v264_v25, %v197_v22  ;;  %v258_v29 = vmul.f32 %v311_v7, %v255_v26 }
 0x129   :  { %268 = vst.msk [vmem:[#allocation11] sm:$0xff] %vm204_vm0, %v266_v27  ;;  %v261_v31 = vadd.f32 %v312_v12, %v258_v29 }
 0x12b   :  { %v263_v32 = vmul.f32 %v261_v31, %v174_v28 }
 0x12d   :  { %v265_v34 = vadd.f32 %v263_v32, %v261_v31 }
 0x12f   :  { %v267_v35 = vadd.f32 %v265_v34, %v200_v33 }
 0x131   :  { %269 = vst.msk [vmem:[#allocation11 + $0x8] sm:$0xff] %vm204_vm0, %v267_v35 }
 0x132   :  { %282 = dma.vmem_to_hbm [thread:$0]  %s275_s16, 256, %s277_s19, [#allocation4], %s481_s26, %s481_s26, %s482_s27  }
 0x133   :  { %478 = dma.done.wait [#allocation4], 256  }
 0x134   :  { %479 = vsyncadd [#allocation4], 4294967040 }
 0x135   :  { %287 = vsyncpa [#allocation3], 1 }
 0x136   :  { %288 = vsyncpa [#allocation6], 1 }
 0x137   :  { %289 = vsyncpa [#allocation9], 1 }
 0x138   :  { %290 = vsyncpa [#allocation4], 1 }

// kernel: tpu_custom_call.1
= control target key start
LH: loop header
LB: loop body
LE: loop exit
PB: predicated region body
PF: predicated region fallthrough
CT: control target
= control target key end

     0   :  { %10 = vsyncpa [#allocation3], 0  ;;  %s577_s0 = inlined_call_operand.hbm [shape: f32[16,32], index: 0, kind: input, shape index: {}]   ;;  %s578_s1 = inlined_call_operand.hbm [shape: f32[16,16], index: 1, kind: input, shape index: {}]   ;;  %s579_s2 = inlined_call_operand.hbm [shape: f32[16,32], index: 2, kind: input, shape index: {}]   ;;  %s580_s3 = inlined_call_operand.hbm [shape: f32[16,32], index: 3, kind: input, shape index: {}]   ;;  %s581_s4 = inlined_call_operand.hbm [shape: f32[4,32], index: 4, kind: input, shape index: {}]   ;;  %s582_s5 = inlined_call_operand.hbm [shape: f32[16,32], index: 5, kind: output, shape index: {}]  }
   0x1   :  { %11 = vsyncpa [#allocation6], 0 }
   0x2   :  { %12 = vsyncpa [#allocation9], 0 }
   0x3   :  { %13 = vsyncpa [#allocation4], 0  ;;  %s31_s20 = sshll.u32 %s578_s1, 4  ;;  %s480_s21 = smov [#allocation5]   ;;  %s32_s20 = int_to_ptr.hbm [resolvable:$true] %s31_s20 }
   0x4   :  { %s33_s22 = sshll.u32 %s480_s21, 4  ;;  %s57_s25 = sshll.u32 %s580_s3, 4  ;;  %s34_s22 = int_to_ptr.vmem [resolvable:$true] %s33_s22  ;;  %s58_s25 = int_to_ptr.hbm [resolvable:$true] %s57_s25 }
   0x5   :  { %s481_s26 = smov 128   ;;  %s482_s27 = smov 8  }
   0x6   :  { %39 = dma.hbm_to_vmem [thread:$0]  %s32_s20, 256, %s34_s22, [#allocation6], %s481_s26, %s481_s26, %s482_s27  }
   0x7   :  { %s483_s28 = smov [#allocation8]   ;;  %s18_s1 = sshll.u32 %s577_s0, 4  ;;  %s19_s1 = int_to_ptr.hbm [resolvable:$true] %s18_s1 }
   0x8   :  { %s59_s29 = sshll.u32 %s483_s28, 4  ;;  %s44_s8 = sshll.u32 %s579_s2, 4  ;;  %s60_s29 = int_to_ptr.vmem [resolvable:$true] %s59_s29  ;;  %s45_s8 = int_to_ptr.hbm [resolvable:$true] %s44_s8 }
   0x9   :  { %65 = dma.hbm_to_vmem [thread:$0]  %s58_s25, 256, %s60_s29, [#allocation9], %s481_s26, %s481_s26, %s482_s27  }
   0xa   :  { %s484_s9 = smov [#allocation2]   ;;  %s485_s11 = smov [#allocation7]  }
   0xb   :  { %s20_s10 = sshll.u32 %s484_s9, 4  ;;  %s46_s0 = sshll.u32 %s485_s11, 4  ;;  %s21_s10 = int_to_ptr.vmem [resolvable:$true] %s20_s10  ;;  %s47_s0 = int_to_ptr.vmem [resolvable:$true] %s46_s0 }
   0xc   :  { %26 = dma.hbm_to_vmem [thread:$0]  %s19_s1, 256, %s21_s10, [#allocation3], %s481_s26, %s481_s26, %s482_s27  }
   0xd   :  { %s71_s14 = sshll.u32 %s581_s4, 4  ;;  %s486_s2 = smov [#allocation10]   ;;  %s72_s14 = int_to_ptr.hbm [resolvable:$true] %s71_s14 }
   0xe   :  { %52 = dma.hbm_to_vmem [thread:$0]  %s45_s8, 256, %s47_s0, [#allocation6], %s481_s26, %s481_s26, %s482_s27  }
   0xf   :  { %s73_s15 = sshll.u32 %s486_s2, 4  ;;  %s74_s15 = int_to_ptr.vmem [resolvable:$true] %s73_s15 }
  0x10   :  { %76 = dma.hbm_to_vmem [thread:$0]  %s72_s14, 64, %s74_s15, [#allocation9]  }
  0x11   :  { %472 = dma.done.wait [#allocation3], 256  }
  0x12   :  { %473 = vsyncadd [#allocation3], 4294967040 }
  0x13   :  { %474 = dma.done.wait [#allocation6], 512  }
  0x14   :  { %475 = vsyncadd [#allocation6], 4294966784 }
  0x15   :  { %476 = dma.done.wait [#allocation9], 320  }
  0x16   :  { %477 = vsyncadd [#allocation9], 4294966976  ;;  %vm204_vm0 = vcmask 261120   ;;  %v546_v0 = vld [vmem:[#allocation2] sm:$0xff]  ;;  %v550_v2 = vld [vmem:[#allocation2 + $0x8] sm:$0xff]  ;;  %v487_v11 = vmov 32.0  }
  0x17   :  { %v205_v1 = vsel %vm204_vm0, %v546_v0, 0.0  ;;  %v208_v3 = vsel %vm204_vm0, %v550_v2, 0.0  ;;  %v97_v4 = vld [vmem:[#allocation5] sm:$0xff]  ;;  %v98_v6 = vld [vmem:[#allocation5 + $0x8] sm:$0xff]  ;;  %v144_v20 = vld [vmem:[#allocation7 + $0x8] sm:$0xff]  ;;  %vm146_vm7 = vcmask 130048  }
  0x18   :  { %206 = vadd.xlane.f32.xlu0 %v205_v1  ;;  %v291_v5 = vmul.f32 -1.442695, %v97_v4  ;;  %v292_v7 = vmul.f32 -1.442695, %v98_v6  ;;  %v143_v21 = vld [vmem:[#allocation7] sm:$0xff]  ;;  %v177_v24 = vld [vmem:[#allocation8 + $0x8] sm:$0xff]  ;;  %167 = vmatpush.msra.mxu0 %v144_v20 }
  0x19   :  { %297 = vmatpush.msra.mxu2 %v144_v20  ;;  %v176_v29 = vld [vmem:[#allocation8] sm:$0xff]  ;;  %193 = vmatpush.msra.mxu1 %v177_v24  ;;  %s488_s4 = smov [#allocation11]   ;;  %s276_s19 = sshll.u32 %s582_s5, 4  ;;  %s277_s19 = int_to_ptr.hbm [resolvable:$true] %s276_s19 }
  0x1a   :  { %314 = vpow2.f32 %v291_v5  ;;  %299 = vmatpush.msra.mxu3 %v177_v24  ;;  %168 = vmatpush.msra.mxu0 %v143_v21  ;;  %s274_s16 = sshll.u32 %s488_s4, 4  ;;  %s275_s16 = int_to_ptr.vmem [resolvable:$true] %s274_s16 }
  0x1b   :  { %316 = vpow2.f32 %v292_v7  ;;  %298 = vmatpush.msra.mxu2 %v143_v21  ;;  %194 = vmatpush.msra.mxu1 %v176_v29  ;;  %v311_v7 = vld [vmem:[#allocation10 + $0x2] ss:$0 sm:$0xff] }
  0x1c   :  { %318 = vrcp.f32 %v487_v11  ;;  %300 = vmatpush.msra.mxu3 %v176_v29 }
  0x20   :  { %209 = vadd.xlane.f32.xlu0 %v208_v3  ;;  %v315_v8 = vpop.eup %314 }
  0x21   :  { %v105_v9 = vadd.f32 1.0, %v315_v8  ;;  %v317_v10 = vpop.eup %316 }
  0x22   :  { %v106_v12 = vadd.f32 1.0, %v317_v10  ;;  %v319_v13 = vpop.eup %318 }
  0x23   :  { %320 = vrcp.f32 %v105_v9  ;;  %v212_v17 = vmul.f32 32.0, %v319_v13  ;;  %vm112_vm1 = vweird.f32 %v105_v9  ;;  %v116_v23 = vand.u32 2147483647, %v105_v9 }
  0x24   :  { %322 = vrcp.f32 %v106_v12  ;;  %v118_v27 = vand.u32 2147483648, %v105_v9  ;;  %vm127_vm4 = vweird.f32 %v106_v12  ;;  %v131_v31 = vand.u32 2147483647, %v106_v12 }
  0x25   :  { %v213_v25 = vsub.f32 1.0, %v212_v17  ;;  %vm117_vm5 = vcmp.eq.f32.partialorder %v116_v23, 8.507059e+37  ;;  %v133_v34 = vand.u32 2147483648, %v106_v12  ;;  %vm216_vm10 = vweird.f32 %v319_v13 }
  0x26   :  { %v119_v32 = vor.u32 1.1754944e-38, %v118_v27  ;;  %vm132_vm9 = vcmp.eq.f32.partialorder %v131_v31, 8.507059e+37 }
  0x27   :  { %v134_v38 = vor.u32 1.1754944e-38, %v133_v34  ;;  %v214_v39 = vmul.f32 %v319_v13, %v213_v25 }
  0x29   :  { %v321_v14 = vpop.eup %320  ;;  %v215_v44 = vadd.f32 %v319_v13, %v214_v39 }
  0x2a   :  { %v108_v15 = vmul.f32 %v321_v14, %v105_v9  ;;  %v323_v16 = vpop.eup %322  ;;  %vm113_vm2 = vweird.f32 %v321_v14 }
  0x2b   :  { %v123_v19 = vmul.f32 %v323_v16, %v106_v12  ;;  %vm554_vm3 = vmor %vm112_vm1, %vm113_vm2  ;;  %vm128_vm6 = vweird.f32 %v323_v16  ;;  %v217_v45 = vsel %vm216_vm10, %v319_v13, %v215_v44  ;;  %v312_v12 = vld [vmem:[#allocation10 + $0x3] ss:$0 sm:$0xff] }
  0x2c   :  { %v109_v18 = vsub.f32 1.0, %v108_v15  ;;  %vm129_vm8 = vmor %vm127_vm4, %vm128_vm6 }
  0x2d   :  { %v124_v28 = vsub.f32 1.0, %v123_v19 }
  0x2e   :  { %v110_v22 = vmul.f32 %v321_v14, %v109_v18 }
  0x2f   :  { %v125_v33 = vmul.f32 %v323_v16, %v124_v28 }
  0x30   :  { %v111_v30 = vadd.f32 %v321_v14, %v110_v22 }
  0x31   :  { %v126_v37 = vadd.f32 %v323_v16, %v125_v33 }
  0x32   :  { %v115_v35 = vsel %vm554_vm3, %v321_v14, %v111_v30 }
  0x33   :  { %v120_v36 = vsel %vm117_vm5, %v119_v32, %v115_v35  ;;  %v130_v41 = vsel %vm129_vm8, %v323_v16, %v126_v37  ;;  %v313_v16 = vld [vmem:[#allocation10 + $0x1] ss:$0 sm:$0xff] }
  0x34   :  { %v137_v40 = vmul.f32 %v120_v36, %v97_v4  ;;  %v135_v42 = vsel %vm132_vm9, %v134_v38, %v130_v41 }
  0x35   :  { %v138_v43 = vmul.f32 %v135_v42, %v98_v6  ;;  %v310_v6 = vld [vmem:[#allocation10] ss:$0 sm:$0xff] }
  0x36   :  { %293 = vmatmul.msk.f32.vlgmr.msra.gmra.mxu0 %vm146_vm7, %v137_v40  ;;  %295 = vmatmul.msk.f32.vlgmr.msra.gmra.mxu1 %vm146_vm7, %v137_v40 }
  0x37   :  { %294 = vmatmul.msk.f32.vlgmr.msra.gmra.mxu2 %vm146_vm7, %v138_v43  ;;  %296 = vmatmul.msk.f32.vlgmr.msra.gmra.mxu3 %vm146_vm7, %v138_v43 }
  0x8b   :  { %v207_v46 = vpop.xlane.xlu0 %206 }
  0x8c   :  { %v218_v47 = vmul.f32 %v217_v45, %v207_v46 }
  0x8e   :  { %v220_v48 = vsub.f32 %v546_v0, %v218_v47 }
  0x90   :  { %v222_v49 = vmul.f32 %v220_v48, %v220_v48 }
  0x92   :  { %v224_v50 = vsel %vm204_vm0, %v222_v49, 0.0 }
  0x93   :  { %225 = vadd.xlane.f32.xlu1 %v224_v50  ;;  %v210_v51 = vpop.xlane.xlu0 %209 }
  0x94   :  { %v219_v52 = vmul.f32 %v217_v45, %v210_v51 }
  0x96   :  { %v221_v53 = vsub.f32 %v550_v2, %v219_v52 }
  0x98   :  { %v223_v54 = vmul.f32 %v221_v53, %v221_v53 }
  0x9a   :  { %v227_v55 = vsel %vm204_vm0, %v223_v54, 0.0 }
  0x9b   :  { %228 = vadd.xlane.f32.xlu1 %v227_v55 }
  0xb3   :  { %v170_v10 = vpop.f32.mrf.mxu0  ;;  %v196_v18 = vpop.f32.mrf.mxu1 }
  0xb4   :  { %v171_v14 = vadd.f32 %v310_v6, %v170_v10  ;;  %v197_v22 = vadd.f32 %v313_v16, %v196_v18 }
  0xba   :  { %v173_v24 = vpop.f32.mrf.mxu2  ;;  %v199_v30 = vpop.f32.mrf.mxu3 }
  0xbb   :  { %v174_v28 = vadd.f32 %v310_v6, %v173_v24  ;;  %v200_v33 = vadd.f32 %v313_v16, %v199_v30 }
 0x106   :  { %v226_v56 = vpop.xlane.xlu1 %225 }
 0x107   :  { %v230_v57 = vmul.f32 %v226_v56, %v217_v45 }
 0x109   :  { %v232_v58 = vadd.f32 1e-05, %v230_v57 }
 0x10b   :  { %324 = vrsqrt.f32 %v232_v58  ;;  %vm240_vm12 = vweird.f32 %v232_v58 }
 0x10e   :  { %v229_v59 = vpop.xlane.xlu1 %228 }
 0x10f   :  { %v231_v60 = vmul.f32 %v229_v59, %v217_v45 }
 0x111   :  { %v325_v61 = vpop.eup %324  ;;  %v233_v62 = vadd.f32 1e-05, %v231_v60 }
 0x112   :  { %v235_v63 = vmul.f32 %v325_v61, %v232_v58  ;;  %vm241_vm11 = vweird.f32 %v325_v61 }
 0x113   :  { %326 = vrsqrt.f32 %v233_v62  ;;  %vm242_vm13 = vmor %vm240_vm12, %vm241_vm11  ;;  %vm250_vm15 = vweird.f32 %v233_v62 }
 0x114   :  { %v236_v0 = vmul.f32 %v325_v61, %v235_v63 }
 0x116   :  { %v237_v1 = vmul.f32 0.5, %v236_v0 }
 0x118   :  { %v238_v3 = vsub.f32 1.5, %v237_v1 }
 0x119   :  { %v327_v4 = vpop.eup %326 }
 0x11a   :  { %v239_v2 = vmul.f32 %v325_v61, %v238_v3  ;;  %v245_v5 = vmul.f32 %v327_v4, %v233_v62  ;;  %vm251_vm14 = vweird.f32 %v327_v4 }
 0x11b   :  { %vm252_vm1 = vmor %vm250_vm15, %vm251_vm14 }
 0x11c   :  { %v243_v8 = vsel %vm242_vm13, %v325_v61, %v239_v2  ;;  %v246_v9 = vmul.f32 %v327_v4, %v245_v5 }
 0x11d   :  { %v254_v11 = vmul.f32 %v243_v8, %v220_v48 }
 0x11e   :  { %v247_v13 = vmul.f32 0.5, %v246_v9 }
 0x11f   :  { %v257_v15 = vmul.f32 %v311_v7, %v254_v11 }
 0x120   :  { %v248_v17 = vsub.f32 1.5, %v247_v13 }
 0x121   :  { %v260_v19 = vadd.f32 %v312_v12, %v257_v15 }
 0x122   :  { %v249_v20 = vmul.f32 %v327_v4, %v248_v17 }
 0x123   :  { %v262_v21 = vmul.f32 %v260_v19, %v171_v14 }
 0x124   :  { %v253_v23 = vsel %vm252_vm1, %v327_v4, %v249_v20 }
 0x125   :  { %v264_v25 = vadd.f32 %v262_v21, %v260_v19  ;;  %v255_v26 = vmul.f32 %v253_v23, %v221_v53 }
 0x127   :  { %v266_v27 = vadd.f32 %v264_v25, %v197_v22  ;;  %v258_v29 = vmul.f32 %v311_v7, %v255_v26 }
 0x129   :  { %268 = vst.msk [vmem:[#allocation11] sm:$0xff] %vm204_vm0, %v266_v27  ;;  %v261_v31 = vadd.f32 %v312_v12, %v258_v29 }
 0x12b   :  { %v263_v32 = vmul.f32 %v261_v31, %v174_v28 }
 0x12d   :  { %v265_v34 = vadd.f32 %v263_v32, %v261_v31 }
 0x12f   :  { %v267_v35 = vadd.f32 %v265_v34, %v200_v33 }
 0x131   :  { %269 = vst.msk [vmem:[#allocation11 + $0x8] sm:$0xff] %vm204_vm0, %v267_v35 }
 0x132   :  { %282 = dma.vmem_to_hbm [thread:$0]  %s275_s16, 256, %s277_s19, [#allocation4], %s481_s26, %s481_s26, %s482_s27  }
 0x133   :  { %478 = dma.done.wait [#allocation4], 256  }
 0x134   :  { %479 = vsyncadd [#allocation4], 4294967040 }
 0x135   :  { %287 = vsyncpa [#allocation3], 1 }
 0x136   :  { %288 = vsyncpa [#allocation6], 1 }
 0x137   :  { %289 = vsyncpa [#allocation9], 1 }
 0x138   :  { %290 = vsyncpa [#allocation4], 1 }

</bundles_post_ra>
